<compile_context>
chip_gen: v7x
topology: tpu7x:2x2x1
jax: 0.10.0
libtpu: 0.0.40
codegen_flags: <defaults>
</compile_context>

<pallas_src>
import jax
import jax.numpy as jnp
from jax.experimental import pallas as pl
from jax.experimental.pallas import tpu as pltpu


def _round_up(x, m):
    return (x + m - 1) // m * m


# ---------------------------------------------------------------------------
# Pass 1: per-node normalization scale (tiled row sums of the adjacency).
# ---------------------------------------------------------------------------
def _degree_scale(graph_pad, n_real, tm, tn, normalize):
    n_pad = graph_pad.shape[0]

    def kernel(g_ref, s_ref, acc_ref):
        i = pl.program_id(0)
        j = pl.program_id(1)

        @pl.when(j == 0)
        def _():
            acc_ref[...] = jnp.zeros_like(acc_ref)

        acc_ref[...] += jnp.sum(g_ref[...], axis=1, keepdims=True)

        @pl.when(j == pl.num_programs(1) - 1)
        def _():
            deg = acc_ref[...]                                      # (tm, 1)
            rows = jax.lax.broadcasted_iota(jnp.int32, (tm, 1), 0) + i * tm
            valid = rows < n_real                 # zero-pad rows -> scale 0
            if normalize:
                s_ref[...] = jnp.where(valid, jax.lax.rsqrt(deg), 0.0)
            else:
                s_ref[...] = jnp.where(valid, deg, 0.0)

    return pl.pallas_call(
        kernel,
        out_shape=jax.ShapeDtypeStruct((n_pad, 1), jnp.float32),
        grid=(n_pad // tm, n_pad // tn),
        in_specs=[pl.BlockSpec((tm, tn), lambda i, j: (i, j))],
        out_specs=pl.BlockSpec((tm, 1), lambda i, j: (i, 0)),
        scratch_shapes=[pltpu.VMEM((tm, 1), jnp.float32)],
        compiler_params=pltpu.CompilerParams(
            dimension_semantics=("parallel", "arbitrary")),
    )(graph_pad)


# ---------------------------------------------------------------------------
# Pass 2: fused Chebyshev propagation + per-order projection.
# ---------------------------------------------------------------------------
def _make_cheb_kernel(*, batch, c_in, c_out, tm, tn, n_pad, normalize,
                      blockdiag):
    f32 = jnp.float32

    def kernel(xr_ref, xc_ref, g_ref, dr_ref, dc_ref, w_ref, b_ref,
               out_ref, x_sc, acc_sc):
        kk = pl.program_id(0)               # Chebyshev order = kk + 1
        i = pl.program_id(1)                # destination row block of nodes
        j = pl.program_id(2)                # source-node (contraction) block
        nj = pl.num_programs(2)

        order = kk + 1
        row0 = pl.multiple_of(i * tm, 8)
        col0 = pl.multiple_of(j * tn, 8)
        new_slot = jax.lax.rem(order, 2)            # slot that gets X_order
        prev_slot = 1 - new_slot                    # slot holding X_{order-1}
        new_off = pl.multiple_of(new_slot * n_pad + row0, 8)
        prev_off = pl.multiple_of(prev_slot * n_pad + col0, 8)

        # ---- order-0 term (T_0 = I): out[i-block] = x @ W_0 + bias.
        #      Runs exactly once per row block, during the first order pass.
        @pl.when(jnp.logical_and(kk == 0, j == 0))
        def _():
            xb = xr_ref[...]                                        # (tm, B*C)
            bias = b_ref[...]
            if blockdiag:
                out_ref[pl.ds(row0, tm), :] = (
                    jnp.dot(xb, w_ref[0], preferred_element_type=f32) + bias)
            else:
                w0 = w_ref[0]                                       # (C, D)
                for b in range(batch):
                    out_ref[pl.ds(row0, tm), b * c_out:(b + 1) * c_out] = (
                        jnp.dot(xb[:, b * c_in:(b + 1) * c_in], w0,
                                preferred_element_type=f32) + bias)

        @pl.when(j == 0)
        def _():
            acc_sc[...] = jnp.zeros_like(acc_sc)

        # ---- Laplacian tile built on the fly (never materialized in HBM).
        a_tile = g_ref[...]                                         # (tm, tn)
        rows = jax.lax.broadcasted_iota(jnp.int32, (tm, tn), 0) + row0
        cols = jax.lax.broadcasted_iota(jnp.int32, (tm, tn), 1) + col0
        eye = (rows == cols).astype(f32)
        if normalize:
            l_tile = eye - (dr_ref[...] * a_tile) * dc_ref[...]  # I - D^-.5 A D^-.5
        else:
            l_tile = eye * dr_ref[...] - a_tile                  # D - A

        # ---- accumulate L[i-block, j-block] @ X_{order-1}[j-block] on the MXU.
        #      Order 1 reads X_0 == x straight from its HBM block; higher
        #      orders read the VMEM scratch slot.  Single matmul code path.
        src = jnp.where(kk == 0, xc_ref[...], x_sc[pl.ds(prev_off, tn), :])
        acc_sc[...] += jnp.dot(l_tile, src, preferred_element_type=f32)

        # ---- finalize this row block on the last contraction step:
        #        X_1 = L X_0 ;  X_k = 2 L X_{k-1} - X_{k-2}  (k >= 2)
        #      then fold its projection through W_order into the resident out.
        @pl.when(j == nj - 1)
        def _():
            lx = acc_sc[...]                                        # (tm, B*C)
            # X_{order-2}: order==2 -> X_0 == x rows; order>=3 -> scratch rows
            # in the slot we are about to overwrite (read-before-write).
            x_km2 = jnp.where(kk == 1, xr_ref[...],
                              x_sc[pl.ds(new_off, tm), :])
            x_new = jnp.where(kk == 0, lx, 2.0 * lx - x_km2)
            x_sc[pl.ds(new_off, tm), :] = x_new
            if blockdiag:
                out_ref[pl.ds(row0, tm), :] += jnp.dot(
                    x_new, w_ref[order], preferred_element_type=f32)
            else:
                wk = w_ref[order]                                   # (C, D)
                for b in range(batch):
                    out_ref[pl.ds(row0, tm),
                            b * c_out:(b + 1) * c_out] += jnp.dot(
                        x_new[:, b * c_in:(b + 1) * c_in], wk,
                        preferred_element_type=f32)

    return kernel


def cheb_conv_forward(inputs, graph, weight, bias=None, *, normalize=True,
                      tile_m=None, tile_n=None):
    """ChebConv forward.

    inputs: (B, N, C); graph: (N, N); weight: (K+1, 1, C, D) (PyTorch layout);
    bias: (1, 1, D) or None.  Returns (B, N, D) float32.
    """
    f32 = jnp.float32
    x = jnp.asarray(inputs, f32)
    g = jnp.asarray(graph, f32)
    w = jnp.asarray(weight, f32)
    batch, n, c_in = x.shape
    n_orders, _, _, c_out = w.shape
    assert g.shape == (n, n) and w.shape[2] == c_in
    # TODO(synk): K == 0 (identity-only polynomial) fast path not implemented;
    # the fused kernel assumes at least one propagation order.
    assert n_orders >= 2, "kernel requires Chebyshev K >= 1"

    w = w[:, 0]                                               # (K+1, C, D)
    b_vec = (jnp.zeros((1, c_out), f32) if bias is None
             else jnp.asarray(bias, f32).reshape(1, c_out))

    # ---- tiling of the (N, N) graph — the only O(N^2) array. ----
    if tile_m is not None or tile_n is not None:              # explicit tiles
        tm = int(tile_m or tile_n)
        tn = int(tile_n or tile_m)
        n_pad = _round_up(n, max(tm, tn))
        assert n_pad % tm == 0 and n_pad % tn == 0
    elif n <= 512:
        n_pad = _round_up(n, 8)
        tm = tn = n_pad                                       # single block
    else:
        tm, tn = 256, 512                                     # 0.5 MiB f32 tile
        n_pad = _round_up(n, tn)
    pad = n_pad - n
    g_p = jnp.pad(g, ((0, pad), (0, pad)))
    # Node-major layout, batch folded into lanes: (N_pad, B*C).  The graph is
    # then read once per order instead of once per batch element.
    x2d = jnp.pad(x, ((0, 0), (0, pad), (0, 0))).transpose(1, 0, 2)
    x2d = x2d.reshape(n_pad, batch * c_in)

    # Pass 1: per-node scale (D^-1/2 for normalized Laplacian / degree).
    scale = _degree_scale(g_p, n, tm, tn, normalize)          # (n_pad, 1)
    scale_col = scale.reshape(1, n_pad)

    # Projection weights: block-diagonal (single lane-folded matmul + one wide
    # store per order/row block) when small; otherwise per-batch loop.
    blockdiag = n_orders * (batch * c_in) * (batch * c_out) * 4 <= (2 << 20)
    if blockdiag:
        w_k = jnp.einsum('be,kcd->kbced', jnp.eye(batch, dtype=f32), w)
        w_k = w_k.reshape(n_orders, batch * c_in, batch * c_out)
        b_k = jnp.tile(b_vec, (1, batch))                     # (1, B*D)
    else:
        w_k, b_k = w, b_vec

    # Pass 2: fused propagation + projection.
    kernel = _make_cheb_kernel(batch=batch, c_in=c_in, c_out=c_out, tm=tm,
                               tn=tn, n_pad=n_pad, normalize=normalize,
                               blockdiag=blockdiag)
    grid = (n_orders - 1, n_pad // tm, n_pad // tn)

    in_specs = [
        # x rows of block i: order-0 projection + the X_0 term of order 2.
        pl.BlockSpec((tm, batch * c_in),
                     lambda k, i, j: (jnp.where(k <= 1, i, 0), 0)),
        # x rows of block j: propagation source for order 1 only.
        pl.BlockSpec((tn, batch * c_in),
                     lambda k, i, j: (jnp.where(k == 0, j, 0), 0)),
        # streamed adjacency tile.
        pl.BlockSpec((tm, tn), lambda k, i, j: (i, j)),
        # normalization scale, row / column views.
        pl.BlockSpec((tm, 1), lambda k, i, j: (i, 0)),
        pl.BlockSpec((1, tn), lambda k, i, j: (0, j)),
        # full weight stack + bias stay resident in VMEM (a few KiB).
        pl.BlockSpec(w_k.shape, lambda k, i, j: (0, 0, 0)),
        pl.BlockSpec(b_k.shape, lambda k, i, j: (0, 0)),
    ]
    out_specs = pl.BlockSpec((n_pad, batch * c_out), lambda k, i, j: (0, 0))

    flops = (2 * (n_orders - 1) * n_pad * n_pad * batch * c_in
             + 2 * n_orders * n_pad * w_k.shape[-2] * w_k.shape[-1])
    bytes_accessed = 4 * ((n_orders - 1) * n_pad * n_pad
                          + 2 * n_pad * batch * c_in
                          + n_pad * batch * c_out)

    out2d = pl.pallas_call(
        kernel,
        out_shape=jax.ShapeDtypeStruct((n_pad, batch * c_out), f32),
        grid=grid,
        in_specs=in_specs,
        out_specs=out_specs,
        scratch_shapes=[
            # ping-pong slots for T_{k-1} x and T_{k-2} x.
            pltpu.VMEM((2 * n_pad, batch * c_in), f32),
            # f32 accumulator for L[i-block, :] @ X_{k-1}.
            pltpu.VMEM((tm, batch * c_in), f32),
        ],
        compiler_params=pltpu.CompilerParams(
            # All three axes carry recursion/reduction state through per-core
            # VMEM scratch, so none of them can be megacore-sharded.
            dimension_semantics=("arbitrary", "arbitrary", "arbitrary"),
            vmem_limit_bytes=48 * 1024 * 1024,
        ),
        cost_estimate=pl.CostEstimate(flops=flops, transcendentals=0,
                                      bytes_accessed=bytes_accessed),
    )(x2d, x2d, g_p, scale, scale_col, w_k, b_k)

    return out2d.reshape(n_pad, batch, c_out)[:n].transpose(1, 0, 2)


# ---------------------------------------------------------------------------
# Pure-JAX reference (literal translation of the PyTorch module).
# ---------------------------------------------------------------------------
def cheb_conv_reference(inputs, graph, weight, bias=None, normalize=True):
    n = graph.shape[0]
    if normalize:
        d = jnp.sum(graph, axis=-1) ** (-0.5)
        lap = jnp.eye(n, dtype=jnp.float32) - (d[:, None] * graph) * d[None, :]
    else:
        lap = jnp.diag(jnp.sum(graph, axis=-1)) - graph
    k_orders = weight.shape[0]
    polys = [jnp.eye(n, dtype=jnp.float32), lap]
    for _ in range(2, k_orders):
        polys.append(2.0 * lap @ polys[-1] - polys[-2])
    t = jnp.stack(polys[:k_orders])                       # (K+1, N, N)
    res = jnp.einsum('knm,bmc->kbnc', t, inputs)
    res = jnp.einsum('kbnc,kcd->kbnd', res, weight[:, 0])
    out = jnp.sum(res, axis=0)
    if bias is not None:
        out = out + bias
    return out


if __name__ == "__main__":
    key = jax.random.PRNGKey(0)
    k_x, k_g, k_w, k_b = jax.random.split(key, 4)

    # ---- Case 1: small graph, single-block path, normalized Laplacian. ----
    B, N, C_IN, C_OUT, K = 2, 16, 4, 8, 3                 # K = Chebyshev order
    x = jax.random.normal(k_x, (B, N, C_IN), dtype=jnp.float32)
    graph = jax.random.uniform(k_g, (N, N), jnp.float32, 0.1, 1.0)
    graph = graph * (1.0 - jnp.eye(N, dtype=jnp.float32))   # no self loops
    weight = jax.random.normal(k_w, (K + 1, 1, C_IN, C_OUT), jnp.float32) * 0.4
    bias = jax.random.normal(k_b, (1, 1, C_OUT), jnp.float32) * 0.1

    out = jax.block_until_ready(
        cheb_conv_forward(x, graph, weight, bias, normalize=True))
    ref = cheb_conv_reference(x, graph, weight, bias, normalize=True)
    assert out.shape == (B, N, C_OUT)
    assert jnp.allclose(out, ref, atol=1e-4, rtol=1e-4), (
        f"normalize=True mismatch, max |diff| = {jnp.max(jnp.abs(out - ref))}")

    # ---- Case 2: unnormalized Laplacian branch (scaled graph keeps it well
    #      conditioned for an f32 comparison). ----
    graph_s = graph * 0.1
    out_u = jax.block_until_ready(
        cheb_conv_forward(x, graph_s, weight, bias, normalize=False))
    ref_u = cheb_conv_reference(x, graph_s, weight, bias, normalize=False)
    assert jnp.allclose(out_u, ref_u, atol=1e-3, rtol=1e-3), (
        f"normalize=False mismatch, max |diff| = {jnp.max(jnp.abs(out_u - ref_u))}")

    # ---- Case 3: multi-block tiled path (N padded to 256, 2x2 node blocks). --
    N2, K2 = 200, 2
    kx2, kg2, kw2 = jax.random.split(jax.random.PRNGKey(1), 3)
    x2 = jax.random.normal(kx2, (B, N2, C_IN), dtype=jnp.float32)
    graph2 = jax.random.uniform(kg2, (N2, N2), jnp.float32, 0.1, 1.0)
    graph2 = graph2 * (1.0 - jnp.eye(N2, dtype=jnp.float32))
    weight2 = jax.random.normal(kw2, (K2 + 1, 1, C_IN, C_OUT), jnp.float32) * 0.4
    out2 = jax.block_until_ready(
        cheb_conv_forward(x2, graph2, weight2, bias, normalize=True,
                          tile_m=128, tile_n=128))
    ref2 = cheb_conv_reference(x2, graph2, weight2, bias, normalize=True)
    assert jnp.allclose(out2, ref2, atol=1e-3, rtol=1e-3), (
        f"tiled mismatch, max |diff| = {jnp.max(jnp.abs(out2 - ref2))}")

    print("KERNEL_OK")
</pallas_src>

<mosaic_0001>
module attributes {stable_mosaic.version = 11 : i64} {
  func.func @kernel(%arg0: i32, %arg1: i32, %arg2: memref<16x16xf32, #tpu.memory_space<vmem>>, %arg3: memref<16x1xf32, #tpu.memory_space<vmem>>, %arg4: memref<16x1xf32, #tpu.memory_space<vmem>>) attributes {dimension_semantics = [#tpu.dimension_semantics<parallel>, #tpu.dimension_semantics<arbitrary>], iteration_bounds = array<i64: 1, 1>, scalar_prefetch = 0 : i64, scratch_operands = 1 : i64, tpu.core_type = #tpu.core_type<tc>, window_params = [{transform_indices = @transform_0, window_bounds = array<i64: 16, 16>}, {transform_indices = @transform_1, window_bounds = array<i64: 16, 1>}]} {
    %c0_i32 = arith.constant 0 : i32
    %0 = arith.cmpi eq, %arg1, %c0_i32 : i32
    %1 = arith.extui %0 : i1 to i32
    %c0_i32_0 = arith.constant 0 : i32
    %2 = arith.cmpi ne, %1, %c0_i32_0 : i32
    scf.if %2 {
      %cst_8 = arith.constant 0.000000e+00 : f32
      %12 = vector.broadcast %cst_8 : f32 to vector<16x1xf32>
      %c0_9 = arith.constant 0 : index
      %c0_10 = arith.constant 0 : index
      %13 = vector.load %arg4[%c0_9, %c0_10] : memref<16x1xf32, #tpu.memory_space<vmem>>, vector<16x1xf32>
      tpu.vector_store %arg4[%c0_9, %c0_10], %12 {strides = array<i32>} : memref<16x1xf32, #tpu.memory_space<vmem>>, vector<16x1xf32>,
    } else {
    }
    %c0 = arith.constant 0 : index
    %c0_1 = arith.constant 0 : index
    %3 = vector.load %arg4[%c0, %c0_1] : memref<16x1xf32, #tpu.memory_space<vmem>>, vector<16x1xf32>
    %c0_2 = arith.constant 0 : index
    %c0_3 = arith.constant 0 : index
    %4 = vector.load %arg2[%c0_2, %c0_3] : memref<16x16xf32, #tpu.memory_space<vmem>>, vector<16x16xf32>
    %cst = arith.constant dense<0.000000e+00> : vector<16xf32>
    %5 = vector.multi_reduction <add>, %4, %cst [1] : vector<16x16xf32> to vector<16xf32>
    %6 = vector.shape_cast %5 : vector<16xf32> to vector<16x1xf32>
    %7 = arith.addf %3, %6 : vector<16x1xf32>
    %c0_4 = arith.constant 0 : index
    %c0_5 = arith.constant 0 : index
    %8 = vector.load %arg4[%c0_4, %c0_5] : memref<16x1xf32, #tpu.memory_space<vmem>>, vector<16x1xf32>
    tpu.vector_store %arg4[%c0_4, %c0_5], %7 {strides = array<i32>} : memref<16x1xf32, #tpu.memory_space<vmem>>, vector<16x1xf32>,
    %c0_i32_6 = arith.constant 0 : i32
    %9 = arith.cmpi eq, %arg1, %c0_i32_6 : i32
    %10 = arith.extui %9 : i1 to i32
    %c0_i32_7 = arith.constant 0 : i32
    %11 = arith.cmpi ne, %10, %c0_i32_7 : i32
    scf.if %11 {
      %c0_8 = arith.constant 0 : index
      %c0_9 = arith.constant 0 : index
      %12 = vector.load %arg4[%c0_8, %c0_9] : memref<16x1xf32, #tpu.memory_space<vmem>>, vector<16x1xf32>
      %13 = tpu.iota {dimensions = array<i32: 0>} : vector<16x1xi32>
      %c16_i32 = arith.constant 16 : i32
      %14 = arith.muli %arg0, %c16_i32 : i32
      %15 = vector.broadcast %14 : i32 to vector<16x1xi32>
      %16 = arith.addi %13, %15 : vector<16x1xi32>
      %c16_i32_10 = arith.constant 16 : i32
      %17 = vector.broadcast %c16_i32_10 : i32 to vector<16x1xi32>
      %18 = arith.cmpi slt, %16, %17 : vector<16x1xi32>
      %19 = math.rsqrt %12 : vector<16x1xf32>
      %cst_11 = arith.constant 0.000000e+00 : f32
      %20 = vector.broadcast %cst_11 : f32 to vector<16x1xf32>
      %21 = arith.select %18, %19, %20 : vector<16x1xi1>, vector<16x1xf32>
      %c0_12 = arith.constant 0 : index
      %c0_13 = arith.constant 0 : index
      %22 = vector.load %arg3[%c0_12, %c0_13] : memref<16x1xf32, #tpu.memory_space<vmem>>, vector<16x1xf32>
      tpu.vector_store %arg3[%c0_12, %c0_13], %21 {strides = array<i32>} : memref<16x1xf32, #tpu.memory_space<vmem>>, vector<16x1xf32>,
    } else {
    }
    return
  }
  func.func @transform_0(%arg0: i32, %arg1: i32) -> (i32, i32) {
    %c0_i32 = arith.constant 0 : i32
    return %arg0, %arg1 : i32, i32
  }
  func.func @transform_1(%arg0: i32, %arg1: i32) -> (i32, i32) {
    %c0_i32 = arith.constant 0 : i32
    %c0_i32_0 = arith.constant 0 : i32
    return %arg0, %c0_i32 : i32, i32
  }
}

</mosaic_0001>

<bundles_post_ra>
// kernel: tpu_custom_call.1
= control target key start
LH: loop header
LB: loop body
LE: loop exit
PB: predicated region body
PF: predicated region fallthrough
CT: control target
= control target key end

     0   :  { %6 = vsyncpa [#allocation4], 0  ;;  %s102_s6 = smov [#allocation3]   ;;  %s140_s0 = inlined_call_operand.hbm [shape: f32[16,16], index: 0, kind: input, shape index: {}]   ;;  %s141_s1 = inlined_call_operand.vmem [shape: f32[16,1], index: 1, kind: output, shape index: {}]  }
   0x1   :  { %s12_s7 = sshll.u32 %s102_s6, 4  ;;  %s78_s10 = scalar_lea.hbm %s140_s0, 256  ;;  %s13_s7 = int_to_ptr.vmem [resolvable:$true] %s12_s7 }
   0x2   :  { %p79_p0 = scmp.ne.s32.totalorder %s140_s0, %s78_s10  ;;  %p82_p1 = scmp.lt.u32.totalorder %s78_s10, %s140_s0 }
   0x4   :  { %p84_p2 = pnand %p82_p1, %p79_p0 }
   0x6   :  { %87 = shalt.err (!%p84_p2)
}
   0x7   :  { %s88_s15 = scalar_lea.vmem %s13_s7, 256  ;;  %p93_p4 = scmp.lt.s32.totalorder %s13_s7, %s13_s7 }
   0x8   :  { %p89_p3 = scmp.ne.s32.totalorder %s13_s7, %s88_s15  ;;  %p94_p5 = scmp.lt.s32.totalorder %s88_s15, %s88_s15 }
   0xa   :  { %p95_p6 = por %p94_p5, %p93_p4 }
   0xc   :  { %p96_p7 = pnand %p95_p6, %p89_p3 }
   0xe   :  { %99 = shalt.err (!%p96_p7)
}
   0xf   :  { %s103_s16 = smov 128   ;;  %s104_s17 = smov 8  }
  0x10   :  { %18 = dma.hbm_to_vmem [thread:$0]  %s140_s0, 256, %s13_s7, [#allocation4], %s103_s16, %s103_s16, %s104_s17  }
  0x11   :  { %100 = dma.done.wait [#allocation4], 256  }
  0x12   :  { %101 = vsyncadd [#allocation4], 4294967040  ;;  %vm26_vm0 = vcmask 7168   ;;  %v105_v0 = vmov 0.0   ;;  %vm33_vm1 = vcmask 130048   ;;  %v31_v1 = vld [vmem:[#allocation3] sm:$0xff] }
  0x13   :  { %27 = vst.msk [vmem:[#allocation2] sm:$0xff] %vm26_vm0, %v105_v0  ;;  %28 = vst.msk [vmem:[#allocation2 + $0x8] sm:$0xff] %vm26_vm0, %v105_v0  ;;  %v32_v2 = vld [vmem:[#allocation3 + $0x8] sm:$0xff]  ;;  %v34_v3 = vsel %vm33_vm1, %v31_v1, 0.0 }
  0x14   :  { %35 = vadd.xlane.f32.xlu0 %v34_v3  ;;  %v37_v4 = vsel %vm33_vm1, %v32_v2, 0.0 }
  0x18   :  { %38 = vadd.xlane.f32.xlu0 %v37_v4 }
  0x1a   :  { %v29_v5 = vld [vmem:[#allocation2] sm:$0xff]  ;;  %v30_v8 = vld [vmem:[#allocation2 + $0x8] sm:$0xff] }
  0xa1   :  { %v36_v6 = vpop.xlane.xlu0 %35 }
  0xa2   :  { %v40_v7 = vadd.f32 %v36_v6, %v29_v5 }
  0xa4   :  { %43 = vst.msk [vmem:[#allocation2] sm:$0xff] %vm26_vm0, %v40_v7 }
  0xa5   :  { %v39_v9 = vpop.xlane.xlu0 %38 }
  0xa6   :  { %v41_v10 = vadd.f32 %v39_v9, %v30_v8 }
  0xa8   :  { %44 = vst.msk [vmem:[#allocation2 + $0x8] sm:$0xff] %vm26_vm0, %v41_v10 }
  0xab   :  { %v48_v11 = vld [vmem:[#allocation2] sm:$0xff] }
  0xac   :  { %74 = vrsqrt.f32 %v48_v11 }
  0xaf   :  { %v49_v12 = vld [vmem:[#allocation2 + $0x8] sm:$0xff] }
  0xb0   :  { %76 = vrsqrt.f32 %v49_v12 }
  0xb6   :  { %v75_v13 = vpop.eup %74 }
  0xb7   :  { %63 = vst.msk [vmem:[%s141_s1] sm:$0xff] %vm26_vm0, %v75_v13 }
  0xba   :  { %v77_v14 = vpop.eup %76 }
  0xbb   :  { %64 = vst.msk [vmem:[%s141_s1 + $0x8] sm:$0xff] %vm26_vm0, %v77_v14 }
  0xbc   :  { %69 = vsyncpa [#allocation4], 1 }

</bundles_post_ra>
